<compile_context>
chip_gen: v6e
topology: v6e:2x2x1
jax: 0.10.0
libtpu: 0.0.40
codegen_flags: <defaults>
</compile_context>

<pallas_src>
import numpy as np
import jax
import jax.numpy as jnp
from jax.experimental import pallas as pl
from jax.experimental.pallas import tpu as pltpu


def _cdiv(a, b):
    return -(-a // b)


def _mse_loss_cov_kernel(x_ref, t_ref, q_ref, psum_ref, rmax_ref):
    tk, L = x_ref.shape
    n_strips = tk // 8
    n_groups = L // 128

    # Probe the hardware roll direction on a 128-lane iota: a lane is "kept" iff a
    # single-lane roll brings its (re, im) partner (lane ^ 1) into it.  Exactly one lane
    # of every pair is kept, independent of rotate direction.
    lane = jax.lax.broadcasted_iota(jnp.int32, (1, 128), 1)
    keep = (pltpu.roll(lane, 1, 1) == jnp.bitwise_xor(lane, 1)).astype(jnp.float32)

    def strip_body(s, acc):
        r0 = pl.multiple_of(s * 8, 8)
        q = q_ref[pl.ds(r0, 8), :]                                    # (8, 1) int32
        # Hoist lane-broadcasts out of the group loop (broadcast_in_dim is not CSE'd).
        q1f = jnp.broadcast_to((q == 1).astype(jnp.float32), (8, 128))
        q2f = jnp.broadcast_to((q == 2).astype(jnp.float32), (8, 128))

        def group_body(g, carry):
            acc_in, rmax_in = carry
            c0 = pl.multiple_of(g * 128, 128)
            x = x_ref[pl.ds(r0, 8), pl.ds(c0, 128)]                   # interleaved re/im
            t = t_ref[pl.ds(r0, 8), pl.ds(c0, 128)]
            d = x - t
            dd = d * d
            tt = t * t
            sd = dd + pltpu.roll(dd, 1, 1)        # |input - target|^2 on keep lanes
            st = tt + pltpu.roll(tt, 1, 1)        # |target|^2         on keep lanes
            # |gap|^2 per time sample: q==1 -> |t|^2*|d|^2 (== |t*d|^2), q==2 -> |d|^2, else 0
            mod2 = sd * (q1f * st + q2f) * keep   # zero off keep lanes / padded (q=0) rows
            return (acc_in + mod2,
                    jnp.maximum(rmax_in, jnp.max(mod2, axis=1, keepdims=True)))

        acc, rmax = jax.lax.fori_loop(
            0, n_groups, group_body,
            (acc, jnp.zeros((8, 1), jnp.float32)),
            unroll=min(n_groups, 4))
        rmax_ref[pl.ds(r0, 8), :] = rmax          # per-row max of |gap|^2 (sqrt in wrapper)
        return acc

    acc = jax.lax.fori_loop(0, n_strips, strip_body,
                            jnp.zeros((8, 128), jnp.float32),
                            unroll=min(n_strips, 4))
    psum_ref[...] = acc                           # lane-dense (8, 128) partial sums


def mse_loss_cov_pallas(input_y, target_y, q, *, max_block_rows=256,
                        vmem_data_budget=12 * 1024 * 1024):
    """input_y, target_y: (K, T, 2) float32; q: (K,) int. Returns (loss, per-row max |gap|)."""
    K, T, c = input_y.shape
    assert c == 2 and target_y.shape == input_y.shape and q.shape == (K,)

    L0 = 2 * T
    x = jnp.asarray(input_y, jnp.float32).reshape(K, L0)   # free reshape, stays interleaved
    t = jnp.asarray(target_y, jnp.float32).reshape(K, L0)

    # Pad lanes to a multiple of 128 (pad amount is even, so re/im pairs stay aligned).
    lane_pad = (-L0) % 128
    L = L0 + lane_pad
    if lane_pad:
        x = jnp.pad(x, ((0, 0), (0, lane_pad)))
        t = jnp.pad(t, ((0, 0), (0, lane_pad)))

    # Row tile: double-buffered x+t fit the data budget; balanced tiles (padding < tk);
    # G >= 2 whenever possible so both v7x TensorCores are used.
    # TODO(synk): if T grows so large that even 8 rows x L overflow VMEM, add a second
    # ("arbitrary") grid axis over time with resident row-max / psum accumulators.
    tk_cap = vmem_data_budget // (16 * L)                  # 2 tensors * 2 buffers * 4 B
    tk_cap = max(8, min(max_block_rows, (tk_cap // 8) * 8))
    G = max(_cdiv(K, tk_cap), 2 if K > 8 else 1)
    tk = _cdiv(_cdiv(K, G), 8) * 8
    assert tk % 8 == 0                                     # sublane-strip fold relies on this
    K_pad = G * tk
    row_pad = K_pad - K
    if row_pad:
        x = jnp.pad(x, ((0, row_pad), (0, 0)))
        t = jnp.pad(t, ((0, row_pad), (0, 0)))
    # Padded rows get q = 0 (neither 1 nor 2) -> contribute zero to sum and row max.
    q_col = jnp.pad(jnp.asarray(q, jnp.int32).reshape(K, 1), ((0, row_pad), (0, 0)))

    data_spec = pl.BlockSpec((tk, L), lambda i: (i, 0))

    # VMEM need: double-buffered inputs + q + outputs, plus headroom for strip temporaries.
    need = 2 * (2 * tk * L * 4 + tk * 4 + 8 * 128 * 4 + tk * 4)
    vmem_limit = min(max(int(1.5 * need) + (4 << 20), 16 << 20), 48 << 20)

    psums, rmax2 = pl.pallas_call(
        _mse_loss_cov_kernel,
        out_shape=(jax.ShapeDtypeStruct((8 * G, 128), jnp.float32),
                   jax.ShapeDtypeStruct((K_pad, 1), jnp.float32)),
        grid_spec=pltpu.PrefetchScalarGridSpec(
            num_scalar_prefetch=0,
            grid=(G,),
            in_specs=[data_spec, data_spec,
                      pl.BlockSpec((tk, 1), lambda i: (i, 0))],
            out_specs=[pl.BlockSpec((8, 128), lambda i: (i, 0)),
                       pl.BlockSpec((tk, 1), lambda i: (i, 0))],
        ),
        compiler_params=pltpu.CompilerParams(
            dimension_semantics=("parallel",),
            vmem_limit_bytes=vmem_limit),
        cost_estimate=pl.CostEstimate(
            flops=10 * K_pad * L,
            transcendentals=0,
            bytes_accessed=(2 * K_pad * L + 2 * K_pad + 8 * G * 128) * 4),
    )(x, t, q_col)

    # Each complex sample is counted exactly once (keep-mask), so divide by K*T.
    loss = jnp.sum(psums) / jnp.float32(K * T)
    rowmax = jnp.sqrt(rmax2[:K, 0])
    return loss, rowmax


class DescribedTensor:
    """Minimal stand-in for the DescribedTensor the original module consumes."""

    def __init__(self, y, q, m_type):
        self.y = y                        # (K, T, 2)
        self.q = q                        # (K,) int
        self.m_type = np.asarray(m_type)  # (K,) strings


class MSELossCov:
    def __init__(self):
        self.max_gap = {}
        self._fn = jax.jit(mse_loss_cov_pallas)

    def __call__(self, input, target):
        loss, rowmax = self._fn(input.y, target.y, target.q)
        # TODO(synk): pandas-based descri.where()/m_type bookkeeping and the .item() dict
        # are host-side glue; reproduced here with plain numpy over per-row maxima.
        rowmax_np = np.asarray(jax.device_get(rowmax))
        m_type = np.asarray(target.m_type)
        self.max_gap = {str(mt): float(rowmax_np[m_type == mt].max())
                        for mt in np.unique(m_type)}
        return loss


def _reference(input_y, target_y, q):
    tr, ti = target_y[..., 0], target_y[..., 1]
    diff = input_y - target_y
    dr, di = diff[..., 0], diff[..., 1]
    mul = jnp.stack([tr * dr - ti * di, tr * di + ti * dr], axis=-1)
    q1 = (q == 1)[:, None, None]
    q2 = (q == 2)[:, None, None]
    gap = jnp.where(q1, mul, jnp.where(q2, diff, jnp.zeros_like(diff)))
    mod2 = gap[..., 0] ** 2 + gap[..., 1] ** 2
    return jnp.mean(mod2), jnp.sqrt(jnp.max(mod2, axis=-1))


if __name__ == "__main__":
    key = jax.random.PRNGKey(0)

    # --- Config 1: K=32, T=128 (lane-aligned, exercises G=2 balanced tiles) ---------
    K, T = 32, 128
    k1, k2, key = jax.random.split(key, 3)
    input_y = jax.random.normal(k1, (K, T, 2), dtype=jnp.float32)
    target_y = jax.random.normal(k2, (K, T, 2), dtype=jnp.float32)
    q = jnp.array([1] * (K // 2) + [2] * (K // 2), dtype=jnp.int32)
    m_type = np.array(["mean"] * 8 + ["ps"] * 8 + ["phaseenv"] * 8 + ["envelope"] * 8)

    inp = DescribedTensor(input_y, q, m_type)
    tgt = DescribedTensor(target_y, q, m_type)

    loss_mod = MSELossCov()
    loss = jax.block_until_ready(loss_mod(inp, tgt))

    ref_loss, ref_rowmax = _reference(input_y, target_y, q)
    np.testing.assert_allclose(np.asarray(loss), np.asarray(ref_loss),
                               rtol=1e-5, atol=1e-6)
    _, rowmax = jax.jit(mse_loss_cov_pallas)(input_y, target_y, q)
    np.testing.assert_allclose(np.asarray(jax.block_until_ready(rowmax)),
                               np.asarray(ref_rowmax), rtol=1e-5, atol=1e-6)
    assert len(loss_mod.max_gap) == 4

    # --- Config 2: K=20, T=50 (exercises lane padding + row padding with q=0) -------
    K2, T2 = 20, 50
    k3, k4, key = jax.random.split(key, 3)
    input_y2 = jax.random.normal(k3, (K2, T2, 2), dtype=jnp.float32)
    target_y2 = jax.random.normal(k4, (K2, T2, 2), dtype=jnp.float32)
    q2 = jnp.array([1] * 7 + [2] * 9 + [0] * 4, dtype=jnp.int32)   # includes untouched rows

    loss2, rowmax2 = jax.jit(mse_loss_cov_pallas)(input_y2, target_y2, q2)
    loss2, rowmax2 = jax.block_until_ready((loss2, rowmax2))
    ref_loss2, ref_rowmax2 = _reference(input_y2, target_y2, q2)
    np.testing.assert_allclose(np.asarray(loss2), np.asarray(ref_loss2),
                               rtol=1e-5, atol=1e-6)
    np.testing.assert_allclose(np.asarray(rowmax2), np.asarray(ref_rowmax2),
                               rtol=1e-5, atol=1e-6)

    print("KERNEL_OK")
</pallas_src>

<mosaic_0001>
module attributes {stable_mosaic.version = 11 : i64} {
  func.func @_mse_loss_cov_kernel(%arg0: i32, %arg1: memref<16x256xf32, #tpu.memory_space<vmem>>, %arg2: memref<16x256xf32, #tpu.memory_space<vmem>>, %arg3: memref<16x1xi32, #tpu.memory_space<vmem>>, %arg4: memref<8x128xf32, #tpu.memory_space<vmem>>, %arg5: memref<16x1xf32, #tpu.memory_space<vmem>>) attributes {dimension_semantics = [#tpu.dimension_semantics<parallel>], iteration_bounds = array<i64: 2>, scalar_prefetch = 0 : i64, scratch_operands = 0 : i64, tpu.core_type = #tpu.core_type<tc>, window_params = [{transform_indices = @transform_0, window_bounds = array<i64: 16, 256>}, {transform_indices = @transform_1, window_bounds = array<i64: 16, 256>}, {transform_indices = @transform_2, window_bounds = array<i64: 16, 1>}, {transform_indices = @transform_3, window_bounds = array<i64: 8, 128>}, {transform_indices = @transform_4, window_bounds = array<i64: 16, 1>}]} {
    %0 = tpu.iota {dimensions = array<i32: 1>} : vector<1x128xi32>
    %c1_i32 = arith.constant 1 : i32
    %1 = tpu.dynamic_rotate %0 by %c1_i32 dim 1 : vector<1x128xi32>, i32 -> vector<1x128xi32>
    %c1_i32_0 = arith.constant 1 : i32
    %2 = vector.broadcast %c1_i32_0 : i32 to vector<1x128xi32>
    %3 = arith.xori %0, %2 : vector<1x128xi32>
    %4 = arith.cmpi eq, %1, %3 : vector<1x128xi32>
    %5 = arith.extui %4 : vector<1x128xi1> to vector<1x128xi32>
    %6 = arith.sitofp %5 : vector<1x128xi32> to vector<1x128xf32>
    %cst = arith.constant 0.000000e+00 : f32
    %7 = vector.broadcast %cst : f32 to vector<8x128xf32>
    %c0_i32 = arith.constant 0 : i32
    %c8_i32 = arith.constant 8 : i32
    %8 = arith.muli %c0_i32, %c8_i32 : i32
    %9 = tpu.assume_multiple %8, 8 : i32
    %10 = arith.index_cast %9 : i32 to index
    %c0 = arith.constant 0 : index
    %11 = vector.load %arg3[%10, %c0] : memref<16x1xi32, #tpu.memory_space<vmem>>, vector<8x1xi32>
    %c1_i32_1 = arith.constant 1 : i32
    %12 = vector.broadcast %c1_i32_1 : i32 to vector<8x1xi32>
    %13 = arith.cmpi eq, %11, %12 : vector<8x1xi32>
    %14 = arith.extui %13 : vector<8x1xi1> to vector<8x1xi32>
    %15 = arith.sitofp %14 : vector<8x1xi32> to vector<8x1xf32>
    %16 = vector.shape_cast %15 : vector<8x1xf32> to vector<8x1xf32>
    %17 = vector.broadcast %16 : vector<8x1xf32> to vector<8x128xf32>
    %c2_i32 = arith.constant 2 : i32
    %18 = vector.broadcast %c2_i32 : i32 to vector<8x1xi32>
    %19 = arith.cmpi eq, %11, %18 : vector<8x1xi32>
    %20 = arith.extui %19 : vector<8x1xi1> to vector<8x1xi32>
    %21 = arith.sitofp %20 : vector<8x1xi32> to vector<8x1xf32>
    %22 = vector.shape_cast %21 : vector<8x1xf32> to vector<8x1xf32>
    %23 = vector.broadcast %22 : vector<8x1xf32> to vector<8x128xf32>
    %cst_2 = arith.constant 0.000000e+00 : f32
    %24 = vector.broadcast %cst_2 : f32 to vector<8x1xf32>
    %c0_i32_3 = arith.constant 0 : i32
    %c128_i32 = arith.constant 128 : i32
    %25 = arith.muli %c0_i32_3, %c128_i32 : i32
    %26 = tpu.assume_multiple %25, 128 : i32
    %27 = arith.index_cast %9 : i32 to index
    %28 = arith.index_cast %26 : i32 to index
    %29 = vector.load %arg1[%27, %28] : memref<16x256xf32, #tpu.memory_space<vmem>>, vector<8x128xf32>
    %30 = arith.index_cast %9 : i32 to index
    %31 = arith.index_cast %26 : i32 to index
    %32 = vector.load %arg2[%30, %31] : memref<16x256xf32, #tpu.memory_space<vmem>>, vector<8x128xf32>
    %33 = arith.subf %29, %32 : vector<8x128xf32>
    %34 = arith.mulf %33, %33 : vector<8x128xf32>
    %35 = arith.mulf %32, %32 : vector<8x128xf32>
    %c1_i32_4 = arith.constant 1 : i32
    %36 = tpu.dynamic_rotate %34 by %c1_i32_4 dim 1 : vector<8x128xf32>, i32 -> vector<8x128xf32>
    %37 = arith.addf %34, %36 : vector<8x128xf32>
    %c1_i32_5 = arith.constant 1 : i32
    %38 = tpu.dynamic_rotate %35 by %c1_i32_5 dim 1 : vector<8x128xf32>, i32 -> vector<8x128xf32>
    %39 = arith.addf %35, %38 : vector<8x128xf32>
    %40 = arith.mulf %17, %39 : vector<8x128xf32>
    %41 = arith.addf %40, %23 : vector<8x128xf32>
    %42 = arith.mulf %37, %41 : vector<8x128xf32>
    %43 = vector.broadcast %6 : vector<1x128xf32> to vector<8x128xf32>
    %44 = arith.mulf %42, %43 : vector<8x128xf32>
    %45 = arith.addf %7, %44 : vector<8x128xf32>
    %cst_6 = arith.constant dense<0xFF800000> : vector<8xf32>
    %46 = vector.multi_reduction <maximumf>, %44, %cst_6 [1] : vector<8x128xf32> to vector<8xf32>
    %47 = vector.shape_cast %46 : vector<8xf32> to vector<8x1xf32>
    %48 = arith.maximumf %24, %47 : vector<8x1xf32>
    %c1_i32_7 = arith.constant 1 : i32
    %c128_i32_8 = arith.constant 128 : i32
    %49 = arith.muli %c1_i32_7, %c128_i32_8 : i32
    %50 = tpu.assume_multiple %49, 128 : i32
    %51 = arith.index_cast %9 : i32 to index
    %52 = arith.index_cast %50 : i32 to index
    %53 = vector.load %arg1[%51, %52] : memref<16x256xf32, #tpu.memory_space<vmem>>, vector<8x128xf32>
    %54 = arith.index_cast %9 : i32 to index
    %55 = arith.index_cast %50 : i32 to index
    %56 = vector.load %arg2[%54, %55] : memref<16x256xf32, #tpu.memory_space<vmem>>, vector<8x128xf32>
    %57 = arith.subf %53, %56 : vector<8x128xf32>
    %58 = arith.mulf %57, %57 : vector<8x128xf32>
    %59 = arith.mulf %56, %56 : vector<8x128xf32>
    %c1_i32_9 = arith.constant 1 : i32
    %60 = tpu.dynamic_rotate %58 by %c1_i32_9 dim 1 : vector<8x128xf32>, i32 -> vector<8x128xf32>
    %61 = arith.addf %58, %60 : vector<8x128xf32>
    %c1_i32_10 = arith.constant 1 : i32
    %62 = tpu.dynamic_rotate %59 by %c1_i32_10 dim 1 : vector<8x128xf32>, i32 -> vector<8x128xf32>
    %63 = arith.addf %59, %62 : vector<8x128xf32>
    %64 = arith.mulf %17, %63 : vector<8x128xf32>
    %65 = arith.addf %64, %23 : vector<8x128xf32>
    %66 = arith.mulf %61, %65 : vector<8x128xf32>
    %67 = vector.broadcast %6 : vector<1x128xf32> to vector<8x128xf32>
    %68 = arith.mulf %66, %67 : vector<8x128xf32>
    %69 = arith.addf %45, %68 : vector<8x128xf32>
    %cst_11 = arith.constant dense<0xFF800000> : vector<8xf32>
    %70 = vector.multi_reduction <maximumf>, %68, %cst_11 [1] : vector<8x128xf32> to vector<8xf32>
    %71 = vector.shape_cast %70 : vector<8xf32> to vector<8x1xf32>
    %72 = arith.maximumf %48, %71 : vector<8x1xf32>
    %c2_i32_12 = arith.constant 2 : i32
    %73 = arith.index_cast %9 : i32 to index
    %c0_13 = arith.constant 0 : index
    %74 = vector.load %arg5[%73, %c0_13] : memref<16x1xf32, #tpu.memory_space<vmem>>, vector<8x1xf32>
    tpu.vector_store %arg5[%73, %c0_13], %72 {strides = array<i32>} : memref<16x1xf32, #tpu.memory_space<vmem>>, vector<8x1xf32>,
    %c1_i32_14 = arith.constant 1 : i32
    %c8_i32_15 = arith.constant 8 : i32
    %75 = arith.muli %c1_i32_14, %c8_i32_15 : i32
    %76 = tpu.assume_multiple %75, 8 : i32
    %77 = arith.index_cast %76 : i32 to index
    %c0_16 = arith.constant 0 : index
    %78 = vector.load %arg3[%77, %c0_16] : memref<16x1xi32, #tpu.memory_space<vmem>>, vector<8x1xi32>
    %c1_i32_17 = arith.constant 1 : i32
    %79 = vector.broadcast %c1_i32_17 : i32 to vector<8x1xi32>
    %80 = arith.cmpi eq, %78, %79 : vector<8x1xi32>
    %81 = arith.extui %80 : vector<8x1xi1> to vector<8x1xi32>
    %82 = arith.sitofp %81 : vector<8x1xi32> to vector<8x1xf32>
    %83 = vector.shape_cast %82 : vector<8x1xf32> to vector<8x1xf32>
    %84 = vector.broadcast %83 : vector<8x1xf32> to vector<8x128xf32>
    %c2_i32_18 = arith.constant 2 : i32
    %85 = vector.broadcast %c2_i32_18 : i32 to vector<8x1xi32>
    %86 = arith.cmpi eq, %78, %85 : vector<8x1xi32>
    %87 = arith.extui %86 : vector<8x1xi1> to vector<8x1xi32>
    %88 = arith.sitofp %87 : vector<8x1xi32> to vector<8x1xf32>
    %89 = vector.shape_cast %88 : vector<8x1xf32> to vector<8x1xf32>
    %90 = vector.broadcast %89 : vector<8x1xf32> to vector<8x128xf32>
    %cst_19 = arith.constant 0.000000e+00 : f32
    %91 = vector.broadcast %cst_19 : f32 to vector<8x1xf32>
    %c0_i32_20 = arith.constant 0 : i32
    %c128_i32_21 = arith.constant 128 : i32
    %92 = arith.muli %c0_i32_20, %c128_i32_21 : i32
    %93 = tpu.assume_multiple %92, 128 : i32
    %94 = arith.index_cast %76 : i32 to index
    %95 = arith.index_cast %93 : i32 to index
    %96 = vector.load %arg1[%94, %95] : memref<16x256xf32, #tpu.memory_space<vmem>>, vector<8x128xf32>
    %97 = arith.index_cast %76 : i32 to index
    %98 = arith.index_cast %93 : i32 to index
    %99 = vector.load %arg2[%97, %98] : memref<16x256xf32, #tpu.memory_space<vmem>>, vector<8x128xf32>
    %100 = arith.subf %96, %99 : vector<8x128xf32>
    %101 = arith.mulf %100, %100 : vector<8x128xf32>
    %102 = arith.mulf %99, %99 : vector<8x128xf32>
    %c1_i32_22 = arith.constant 1 : i32
    %103 = tpu.dynamic_rotate %101 by %c1_i32_22 dim 1 : vector<8x128xf32>, i32 -> vector<8x128xf32>
    %104 = arith.addf %101, %103 : vector<8x128xf32>
    %c1_i32_23 = arith.constant 1 : i32
    %105 = tpu.dynamic_rotate %102 by %c1_i32_23 dim 1 : vector<8x128xf32>, i32 -> vector<8x128xf32>
    %106 = arith.addf %102, %105 : vector<8x128xf32>
    %107 = arith.mulf %84, %106 : vector<8x128xf32>
    %108 = arith.addf %107, %90 : vector<8x128xf32>
    %109 = arith.mulf %104, %108 : vector<8x128xf32>
    %110 = vector.broadcast %6 : vector<1x128xf32> to vector<8x128xf32>
    %111 = arith.mulf %109, %110 : vector<8x128xf32>
    %112 = arith.addf %69, %111 : vector<8x128xf32>
    %cst_24 = arith.constant dense<0xFF800000> : vector<8xf32>
    %113 = vector.multi_reduction <maximumf>, %111, %cst_24 [1] : vector<8x128xf32> to vector<8xf32>
    %114 = vector.shape_cast %113 : vector<8xf32> to vector<8x1xf32>
    %115 = arith.maximumf %91, %114 : vector<8x1xf32>
    %c1_i32_25 = arith.constant 1 : i32
    %c128_i32_26 = arith.constant 128 : i32
    %116 = arith.muli %c1_i32_25, %c128_i32_26 : i32
    %117 = tpu.assume_multiple %116, 128 : i32
    %118 = arith.index_cast %76 : i32 to index
    %119 = arith.index_cast %117 : i32 to index
    %120 = vector.load %arg1[%118, %119] : memref<16x256xf32, #tpu.memory_space<vmem>>, vector<8x128xf32>
    %121 = arith.index_cast %76 : i32 to index
    %122 = arith.index_cast %117 : i32 to index
    %123 = vector.load %arg2[%121, %122] : memref<16x256xf32, #tpu.memory_space<vmem>>, vector<8x128xf32>
    %124 = arith.subf %120, %123 : vector<8x128xf32>
    %125 = arith.mulf %124, %124 : vector<8x128xf32>
    %126 = arith.mulf %123, %123 : vector<8x128xf32>
    %c1_i32_27 = arith.constant 1 : i32
    %127 = tpu.dynamic_rotate %125 by %c1_i32_27 dim 1 : vector<8x128xf32>, i32 -> vector<8x128xf32>
    %128 = arith.addf %125, %127 : vector<8x128xf32>
    %c1_i32_28 = arith.constant 1 : i32
    %129 = tpu.dynamic_rotate %126 by %c1_i32_28 dim 1 : vector<8x128xf32>, i32 -> vector<8x128xf32>
    %130 = arith.addf %126, %129 : vector<8x128xf32>
    %131 = arith.mulf %84, %130 : vector<8x128xf32>
    %132 = arith.addf %131, %90 : vector<8x128xf32>
    %133 = arith.mulf %128, %132 : vector<8x128xf32>
    %134 = vector.broadcast %6 : vector<1x128xf32> to vector<8x128xf32>
    %135 = arith.mulf %133, %134 : vector<8x128xf32>
    %136 = arith.addf %112, %135 : vector<8x128xf32>
    %cst_29 = arith.constant dense<0xFF800000> : vector<8xf32>
    %137 = vector.multi_reduction <maximumf>, %135, %cst_29 [1] : vector<8x128xf32> to vector<8xf32>
    %138 = vector.shape_cast %137 : vector<8xf32> to vector<8x1xf32>
    %139 = arith.maximumf %115, %138 : vector<8x1xf32>
    %c2_i32_30 = arith.constant 2 : i32
    %140 = arith.index_cast %76 : i32 to index
    %c0_31 = arith.constant 0 : index
    %141 = vector.load %arg5[%140, %c0_31] : memref<16x1xf32, #tpu.memory_space<vmem>>, vector<8x1xf32>
    tpu.vector_store %arg5[%140, %c0_31], %139 {strides = array<i32>} : memref<16x1xf32, #tpu.memory_space<vmem>>, vector<8x1xf32>,
    %c2_i32_32 = arith.constant 2 : i32
    %c0_33 = arith.constant 0 : index
    %c0_34 = arith.constant 0 : index
    %142 = vector.load %arg4[%c0_33, %c0_34] : memref<8x128xf32, #tpu.memory_space<vmem>>, vector<8x128xf32>
    tpu.vector_store %arg4[%c0_33, %c0_34], %136 {strides = array<i32>} : memref<8x128xf32, #tpu.memory_space<vmem>>, vector<8x128xf32>,
    return
  }
  func.func @transform_0(%arg0: i32) -> (i32, i32) {
    %c0_i32 = arith.constant 0 : i32
    %c0_i32_0 = arith.constant 0 : i32
    return %arg0, %c0_i32 : i32, i32
  }
  func.func @transform_1(%arg0: i32) -> (i32, i32) {
    %c0_i32 = arith.constant 0 : i32
    %c0_i32_0 = arith.constant 0 : i32
    return %arg0, %c0_i32 : i32, i32
  }
  func.func @transform_2(%arg0: i32) -> (i32, i32) {
    %c0_i32 = arith.constant 0 : i32
    %c0_i32_0 = arith.constant 0 : i32
    return %arg0, %c0_i32 : i32, i32
  }
  func.func @transform_3(%arg0: i32) -> (i32, i32) {
    %c0_i32 = arith.constant 0 : i32
    %c0_i32_0 = arith.constant 0 : i32
    return %arg0, %c0_i32 : i32, i32
  }
  func.func @transform_4(%arg0: i32) -> (i32, i32) {
    %c0_i32 = arith.constant 0 : i32
    %c0_i32_0 = arith.constant 0 : i32
    return %arg0, %c0_i32 : i32, i32
  }
}

</mosaic_0001>

<bundles_post_ra>
// kernel: mse_loss_cov_pallas.1
= control target key start
LH: loop header
LB: loop body
LE: loop exit
PB: predicated region body
PF: predicated region fallthrough
CT: control target
= control target key end

     0   :  { %s620_s15 = smov 0   ;;  %s673_s0 = inlined_call_operand.vmem [shape: f32[32,256], index: 0, kind: input, shape index: {}]   ;;  %s674_s1 = inlined_call_operand.vmem [shape: f32[32,256], index: 1, kind: input, shape index: {}]   ;;  %s675_s2 = inlined_call_operand.vmem [shape: s32[32,1], index: 2, kind: input, shape index: {}]   ;;  %s676_s3 = inlined_call_operand.vmem [shape: f32[16,128], index: 3, kind: output, shape index: {0}]   ;;  %s677_s4 = inlined_call_operand.vmem [shape: f32[32,1], index: 4, kind: output, shape index: {1}]  }
   0x1 LB: > { %s626_s16 = sadd.s32 4294967295, %s590_s15   ;;  %p533_p0 = scmp.ge.s32.totalorder %s590_s15, 1  ;;  %s590_s15 = sphi %s620_s15, %s15_s15  }
   0x2   : > { %p190_p1 = scmp.lt.s32.totalorder %s590_s15, 3 }
   0x4   : > { %p191_p2 = pnand %p533_p0, %p190_p1 }
   0x5   : > { %s534_s17 = sshll.u32 (!%p191_p2), %s626_s16, 1  ;;  %s594_s29 = smov (!%p191_p2), 1  }
   0x6   : > { %194 = sbr.rel (%p191_p2) target bundleno = 310 (0x136), region = 32  ;;  %p233_p3 = scmp.lt.s32.totalorder (!%p191_p2), %s534_s17, 3 }
   0x7   : > { %p252_p4 = scmp.lt.s32.totalorder (!%p191_p2), %s626_s16, 1 }
   0xb   : > { %v592_v0 = vmov 0   ;;  %s679_s17 = smov (!%p233_p3, %s534_s17), 3  ;;  %v593_v4 = vmov 0.0   ;;  %v262_v20 = vlaneseq  ;;  %s681_s16 = smov (!%p252_p4, %s626_s16), 1  ;;  %vm340_vm5 = vcmask 7168  }
   0xc   : > { %573 = vset.pattern.permute.xlu0 %v592_v0  ;;  %s541_s18 = sshll.u32 %s679_s17, 3  ;;  %s560_s19 = sshll.u32 %s679_s17, 4 }
   0xd   : > { %s250_s22 = scalar_lea.vmem %s675_s2, %s541_s18  ;;  %s244_s25 = scalar_lea.vmem %s674_s1, %s560_s19  ;;  %v263_v25 = vand.u32 127, %v262_v20  ;;  %v308_v39 = vshrl.u32 %v262_v20, 7 }
   0xe   : > { %v270_v1 = vld [vmem:[%s250_s22] sm:$0xff]  ;;  %v550_v2 = vld [vmem:[%s250_s22 + $0x8] sm:$0xff]  ;;  %s237_s28 = scalar_lea.vmem %s673_s0, %s560_s19  ;;  %v554_v8 = vld [vmem:[%s244_s25 + $0x10] sm:$0xff]  ;;  %s542_s30 = sshll.u32 %s681_s16, 3 }
   0xf   : > { %vm271_vm0 = vcmp.eq.s32.totalorder %v270_v1, 1  ;;  %vm279_vm1 = vcmp.eq.s32.totalorder %v270_v1, 2  ;;  %vm344_vm2 = vcmp.eq.s32.totalorder %v550_v2, 1  ;;  %vm352_vm3 = vcmp.eq.s32.totalorder %v550_v2, 2  ;;  %v294_v3 = vld [vmem:[%s244_s25] sm:$0xff]  ;;  %v556_v15 = vld [vmem:[%s244_s25 + $0x18] sm:$0xff]  ;;  %s255_s7 = scalar_lea.vmem %s676_s3, %s542_s30  ;;  %s260_s10 = scalar_lea.vmem %s677_s4, %s541_s18 }
  0x10   : > { %v546_v5 = vsel %vm271_vm0, 1.0, %v593_v4  ;;  %v551_v6 = vsel %vm344_vm2, 1.0, %v593_v4  ;;  %v297_v7 = vmul.f32 %v294_v3, %v294_v3  ;;  %v547_v10 = vsel %vm279_vm1, 1.0, %v593_v4  ;;  %v291_v13 = vld [vmem:[%s237_s28] sm:$0xff]  ;;  %v549_v16 = vld [vmem:[%s244_s25 + $0x8] sm:$0xff]  ;;  %v553_v22 = vld [vmem:[%s237_s28 + $0x10] sm:$0xff] }
  0x11   : > { %v574_v9 = vpack.i.bf16 %v551_v6, %v546_v5  ;;  %v552_v11 = vsel %vm352_vm3, 1.0, %v593_v4  ;;  %v370_v12 = vmul.f32 %v554_v8, %v554_v8  ;;  %v295_v17 = vsub.f32 %v291_v13, %v294_v3  ;;  %v548_v21 = vld [vmem:[%s237_s28 + $0x8] sm:$0xff]  ;;  %v555_v27 = vld [vmem:[%s237_s28 + $0x18] sm:$0xff] }
  0x12   : > { %301 = vrot.lane.b32.xlu1 %v297_v7, %s594_s29  ;;  %v579_v14 = vpack.i.bf16 %v552_v11, %v547_v10  ;;  %v394_v18 = vmul.f32 %v556_v15, %v556_v15  ;;  %v325_v19 = vmul.f32 %v549_v16, %v549_v16  ;;  %v323_v24 = vsub.f32 %v548_v21, %v549_v16 }
  0x13   : > { %575 = vperm.xlu0 %573, %v574_v9   ;;  %v296_v23 = vmul.f32 %v295_v17, %v295_v17  ;;  %v368_v26 = vsub.f32 %v553_v22, %v554_v8  ;;  %v392_v30 = vsub.f32 %v555_v27, %v556_v15  ;;  %v266_v46 = vxor.u32 1, %v263_v25 }
  0x14   : > { %v324_v28 = vmul.f32 %v323_v24, %v323_v24  ;;  %v309_v49 = vsub.s32 0, %v308_v39 }
  0x15   : > { %v369_v29 = vmul.f32 %v368_v26, %v368_v26  ;;  %v393_v31 = vmul.f32 %v392_v30, %v392_v30 }
  0x16   : > { %374 = vrot.lane.b32.xlu1 %v370_v12, %s594_s29 }
  0x17   : > { %580 = vperm.xlu0 %573, %v579_v14  }
  0x1a   : > { %398 = vrot.lane.b32.xlu1 %v394_v18, %s594_s29 }
  0x1b   : > { %329 = vrot.lane.b32.xlu0 %v325_v19, %s594_s29 }
  0x1e   : > { %298 = vrot.lane.b32.xlu1 %v296_v23, %s594_s29 }
  0x1f   : > { %264 = vrot.lane.b32.xlu0 %v263_v25, %s594_s29 }
  0x22   : > { %326 = vrot.lane.b32.xlu1 %v324_v28, %s594_s29 }
  0x23   : > { %371 = vrot.lane.b32.xlu0 %v369_v29, %s594_s29 }
  0x27   : > { %395 = vrot.lane.b32.xlu0 %v393_v31, %s594_s29 }
  0x84   : > { %v302_v32 = vpop.permute.xlu1 %301 }
  0x85   : > { %v303_v40 = vadd.f32 %v302_v32, %v297_v7 }
  0x88   : > { %v375_v33 = vpop.permute.xlu1 %374 }
  0x89   : > { %v376_v47 = vadd.f32 %v375_v33, %v370_v12 }
  0x8c   : > { %v399_v35 = vpop.permute.xlu1 %398 }
  0x8d   : > { %v400_v57 = vadd.f32 %v399_v35, %v394_v18 }
  0x8e   : > { %v576_v34 = vpop.permute.xlu0 %575 }
  0x8f   : > { %v577_v38 = vunpack.i.l.bf16 %v576_v34  ;;  %v578_v48 = vunpack.i.h.bf16 %v576_v34 }
  0x90   : > { %v299_v37 = vpop.permute.xlu1 %298 }
  0x91   : > { %v304_v44 = vmul.f32 %v577_v38, %v303_v40  ;;  %v300_v51 = vadd.f32 %v299_v37, %v296_v23  ;;  %v377_v59 = vmul.f32 %v578_v48, %v376_v47  ;;  %v401_v5 = vmul.f32 %v578_v48, %v400_v57 }
  0x92   : > { %v581_v36 = vpop.permute.xlu0 %580 }
  0x93   : > { %v582_v41 = vunpack.i.l.bf16 %v581_v36  ;;  %v583_v55 = vunpack.i.h.bf16 %v581_v36 }
  0x94   : > { %v327_v43 = vpop.permute.xlu1 %326 }
  0x95   : > { %v305_v50 = vadd.f32 %v582_v41, %v304_v44  ;;  %v328_v53 = vadd.f32 %v327_v43, %v324_v28  ;;  %v378_v0 = vadd.f32 %v583_v55, %v377_v59  ;;  %v402_v8 = vadd.f32 %v583_v55, %v401_v5 }
  0x96   : > { %v330_v42 = vpop.permute.xlu0 %329 }
  0x97   : > { %v331_v45 = vadd.f32 %v330_v42, %v325_v19  ;;  %v306_v60 = vmul.f32 %v305_v50, %v300_v51 }
  0x99   : > { %v332_v52 = vmul.f32 %v577_v38, %v331_v45 }
  0x9a   : > { %v265_v54 = vpop.permute.xlu0 %264 }
  0x9b   : > { %vm267_vm4 = vcmp.eq.s32.totalorder %v265_v54, %v266_v46  ;;  %v333_v56 = vadd.f32 %v582_v41, %v332_v52 }
  0x9c   : > { %v545_v58 = vsel %vm267_vm4, 1.0, %v593_v4 }
  0x9d   : > { %v310_v61 = vrot.slane %v545_v58, %v309_v49  ;;  %v334_v62 = vmul.f32 %v333_v56, %v328_v53 }
  0x9e   : > { %v372_v63 = vpop.permute.xlu0 %371 }
  0x9f   : > { %v373_v1 = vadd.f32 %v372_v63, %v369_v29  ;;  %v311_v2 = vmul.f32 %v310_v61, %v306_v60  ;;  %v335_v3 = vmul.f32 %v334_v62, %v310_v61 }
  0xa1   : > { %v379_v6 = vmul.f32 %v378_v0, %v373_v1  ;;  %313 = vmax.xlane.f32.xlu1 %v311_v2  ;;  %337 = vmax.xlane.f32.xlu0 %v335_v3  ;;  %v336_v10 = vadd.f32 %v335_v3, %v311_v2 }
  0xa2   : > { %v396_v7 = vpop.permute.xlu0 %395 }
  0xa3   : > { %v397_v9 = vadd.f32 %v396_v7, %v393_v31  ;;  %v380_v4 = vmul.f32 %v379_v6, %v310_v61 }
  0xa5   : > { %v403_v11 = vmul.f32 %v402_v8, %v397_v9  ;;  %382 = vmax.xlane.f32.xlu0 %v380_v4  ;;  %v381_v12 = vadd.f32 %v380_v4, %v336_v10 }
  0xa7   : > { %v404_v13 = vmul.f32 %v403_v11, %v310_v61 }
  0xa9   : > { %406 = vmax.xlane.f32.xlu1 %v404_v13  ;;  %v405_v14 = vadd.f32 %v404_v13, %v381_v12 }
  0xab   : > { %411 = vst [vmem:[%s255_s7] sm:$0xff] %v405_v14 }
 0x12a   : > { %v338_v15 = vpop.xlane.xlu0 %337  ;;  %v314_v16 = vpop.xlane.xlu1 %313 }
 0x12b   : > { %v315_v17 = vmax.f32 %v314_v16, 0.0 }
 0x12d   : > { %v339_v18 = vmax.f32 %v315_v17, %v338_v15 }
 0x12e   : > { %v383_v19 = vpop.xlane.xlu0 %382 }
 0x12f   : > { %341 = vst.msk [vmem:[%s260_s10] sm:$0xff] %vm340_vm5, %v339_v18  ;;  %v384_v20 = vmax.f32 %v383_v19, 0.0 }
 0x132   : > { %v407_v21 = vpop.xlane.xlu1 %406 }
 0x133   : > { %v408_v22 = vmax.f32 %v384_v20, %v407_v21 }
 0x135   : > { %557 = vst.msk [vmem:[%s260_s10 + $0x8] sm:$0xff] %vm340_vm5, %v408_v22 }
 0x136 PF: > { %s15_s15 = sadd.s32 1, %s590_s15  }
 0x137   : > { %p12_p5 = scmp.ge.s32.totalorder %s15_s15, 4  }
 0x139   :  { %14 = sbr.rel (!%p12_p5) target bundleno = 1 (0x1), region = 90 }

</bundles_post_ra>
